<compile_context>
chip_gen: v5e
topology: v5e:2x2
jax: 0.10.0
libtpu: 0.0.40
codegen_flags: <defaults>
</compile_context>

<pallas_src>
import functools

import numpy as np
import jax
import jax.numpy as jnp
from jax.experimental import pallas as pl
from jax.experimental.pallas import tpu as pltpu


_PARALLEL = pltpu.CompilerParams(dimension_semantics=("parallel",))


# ----------------------------------------------------------------------------
# Pallas kernels
# ----------------------------------------------------------------------------
def _affine_demod_kernel(wv_ref, awT_ref, ab_ref, wsq_ref, st_ref, d_ref):
    # styles = w @ awT + 1 ;  dcoefs = rsqrt(styles^2 @ sum_k(weight_k^2) + 1e-8)
    st = jnp.dot(wv_ref[...], awT_ref[...], preferred_element_type=jnp.float32) + ab_ref[...]
    st_ref[...] = st
    d = jnp.dot(st * st, wsq_ref[...], preferred_element_type=jnp.float32)
    d_ref[...] = jax.lax.rsqrt(d + 1e-8)


def _affine_demod_rgb_kernel(wv_ref, wr_ref, awT_ref, ab_ref, wsq_ref,
                             awTr_ref, abr_ref, st_ref, d_ref, str_ref):
    # conv1 affine + demod, and the torgb affine, fused into one call.
    st = jnp.dot(wv_ref[...], awT_ref[...], preferred_element_type=jnp.float32) + ab_ref[...]
    st_ref[...] = st
    d = jnp.dot(st * st, wsq_ref[...], preferred_element_type=jnp.float32)
    d_ref[...] = jax.lax.rsqrt(d + 1e-8)
    str_ref[...] = (jnp.dot(wr_ref[...], awTr_ref[...], preferred_element_type=jnp.float32)
                    + abr_ref[...])


def _rowop_kernel(m_ref, x_ref, o_ref):
    # Apply a small 1-D upfirdn operator M along the row axis: o = M @ x  (per batch).
    o_ref[0] = jnp.dot(m_ref[...], x_ref[0], preferred_element_type=jnp.float32)


def _modconv_body(x_ref, st_ref, w_ref, d_ref, nz_ref, b_ref, xm_ref,
                  n_rows, wp, act_gain):
    # Modulate once (f32 VPU), keep the bf16 copy in a VMEM scratch for the MXU.
    xm_ref[...] = (x_ref[0] * st_ref[0]).astype(jnp.bfloat16)
    co = w_ref.shape[2]
    acc = jnp.zeros((n_rows, co), jnp.float32)
    # 3x3 conv as 9 shifted matmuls on the flattened padded feature map.  Output rows
    # live in "wide" coordinates r = h*Wp + w (garbage columns w >= W sliced off outside).
    for t in range(9):
        dy, dx = t // 3, t % 3
        s = dy * wp + dx
        acc = acc + jnp.dot(xm_ref[s:s + n_rows, :], w_ref[t],
                            preferred_element_type=jnp.float32)
    acc = acc * d_ref[0] + nz_ref[...]                     # demod + noise
    acc = acc + b_ref[...]                                 # bias
    acc = jnp.where(acc >= 0.0, acc, 0.2 * acc) * act_gain  # lrelu * sqrt(2)
    return acc


def _modconv_kernel(x_ref, st_ref, w_ref, d_ref, nz_ref, b_ref, ox_ref, xm_ref,
                    *, n_rows, wp, act_gain):
    ox_ref[0] = _modconv_body(x_ref, st_ref, w_ref, d_ref, nz_ref, b_ref, xm_ref,
                              n_rows, wp, act_gain)


def _modconv_rgb_kernel(x_ref, st_ref, w_ref, d_ref, nz_ref, b_ref,
                        wrgb_ref, brgb_ref, res_ref, ox_ref, oimg_ref, xm_ref,
                        *, n_rows, wp, act_gain):
    acc = _modconv_body(x_ref, st_ref, w_ref, d_ref, nz_ref, b_ref, xm_ref,
                        n_rows, wp, act_gain)
    ox_ref[0] = acc
    # Fused ToRGB (1x1 modulated conv, styles folded into wrgb) + skip-image add.
    # TODO(synk): RGB output keeps Co=3 on the lane axis (masked stores); a lane-dense
    # [3, HW] layout would need an in-kernel transpose.
    rgb = jnp.dot(acc, wrgb_ref[0], preferred_element_type=jnp.float32) + brgb_ref[...]
    oimg_ref[0] = rgb + res_ref[0]


# ----------------------------------------------------------------------------
# pallas_call wrappers
# ----------------------------------------------------------------------------
def affine_demod(wvec, awT, ab, wsq):
    B = wvec.shape[0]
    ci, co = awT.shape[1], wsq.shape[1]
    return pl.pallas_call(
        _affine_demod_kernel,
        out_shape=(jax.ShapeDtypeStruct((B, ci), jnp.float32),
                   jax.ShapeDtypeStruct((B, co), jnp.float32)),
    )(wvec, awT, ab, wsq)


def affine_demod_rgb(wvec, wrgb_vec, awT, ab, wsq, awTr, abr):
    B = wvec.shape[0]
    ci, co, cr = awT.shape[1], wsq.shape[1], awTr.shape[1]
    return pl.pallas_call(
        _affine_demod_rgb_kernel,
        out_shape=(jax.ShapeDtypeStruct((B, ci), jnp.float32),
                   jax.ShapeDtypeStruct((B, co), jnp.float32),
                   jax.ShapeDtypeStruct((B, cr), jnp.float32)),
    )(wvec, wrgb_vec, awT, ab, wsq, awTr, abr)


def rowop(x, M):
    # x: [B, Nin, L], M: [Nout, Nin] -> [B, Nout, L]   (lane-dense 1-D upfirdn pass)
    B, nin, L = x.shape
    nout = M.shape[0]
    return pl.pallas_call(
        _rowop_kernel,
        grid=(B,),
        in_specs=[pl.BlockSpec((nout, nin), lambda b: (0, 0)),
                  pl.BlockSpec((1, nin, L), lambda b: (b, 0, 0))],
        out_specs=pl.BlockSpec((1, nout, L), lambda b: (b, 0, 0)),
        out_shape=jax.ShapeDtypeStruct((B, nout, L), jnp.float32),
        compiler_params=_PARALLEL,
    )(M, x)


def modconv(xlin, styles, taps, dcoefs, noise_wide, bias, *, h, wp, act_gain,
            shared_x=False):
    # xlin: [Bx, Lp, Ci] flattened padded feature map (Lp = (h+2)*wp + 2)
    # TODO(synk): for production channel counts / resolutions, tile n_rows/Co/Ci with a
    # K-reduction grid + f32 VMEM accumulator; the toy shapes fit one block per batch.
    B = styles.shape[0]
    lp, ci = xlin.shape[1], xlin.shape[2]
    co = taps.shape[2]
    n_rows = h * wp
    x_map = (lambda b: (0, 0, 0)) if shared_x else (lambda b: (b, 0, 0))
    return pl.pallas_call(
        functools.partial(_modconv_kernel, n_rows=n_rows, wp=wp, act_gain=act_gain),
        grid=(B,),
        in_specs=[
            pl.BlockSpec((1, lp, ci), x_map),
            pl.BlockSpec((1, 1, ci), lambda b: (b, 0, 0)),
            pl.BlockSpec((9, ci, co), lambda b: (0, 0, 0)),
            pl.BlockSpec((1, 1, co), lambda b: (b, 0, 0)),
            pl.BlockSpec((n_rows, 1), lambda b: (0, 0)),
            pl.BlockSpec((1, co), lambda b: (0, 0)),
        ],
        out_specs=pl.BlockSpec((1, n_rows, co), lambda b: (b, 0, 0)),
        out_shape=jax.ShapeDtypeStruct((B, n_rows, co), jnp.float32),
        scratch_shapes=[pltpu.VMEM((lp, ci), jnp.bfloat16)],
        compiler_params=_PARALLEL,
    )(xlin, styles.reshape(B, 1, ci), taps, dcoefs.reshape(B, 1, co), noise_wide, bias)


def modconv_rgb(xlin, styles, taps, dcoefs, noise_wide, bias,
                wrgb_mod, brgb, res_wide, *, h, wp, act_gain, shared_x=False):
    B = styles.shape[0]
    lp, ci = xlin.shape[1], xlin.shape[2]
    co = taps.shape[2]
    cimg = wrgb_mod.shape[2]
    n_rows = h * wp
    x_map = (lambda b: (0, 0, 0)) if shared_x else (lambda b: (b, 0, 0))
    res_map = (lambda b: (0, 0, 0)) if res_wide.shape[0] == 1 else (lambda b: (b, 0, 0))
    return pl.pallas_call(
        functools.partial(_modconv_rgb_kernel, n_rows=n_rows, wp=wp, act_gain=act_gain),
        grid=(B,),
        in_specs=[
            pl.BlockSpec((1, lp, ci), x_map),
            pl.BlockSpec((1, 1, ci), lambda b: (b, 0, 0)),
            pl.BlockSpec((9, ci, co), lambda b: (0, 0, 0)),
            pl.BlockSpec((1, 1, co), lambda b: (b, 0, 0)),
            pl.BlockSpec((n_rows, 1), lambda b: (0, 0)),
            pl.BlockSpec((1, co), lambda b: (0, 0)),
            pl.BlockSpec((1, co, cimg), lambda b: (b, 0, 0)),
            pl.BlockSpec((1, cimg), lambda b: (0, 0)),
            pl.BlockSpec((1, n_rows, cimg), res_map),
        ],
        out_specs=(pl.BlockSpec((1, n_rows, co), lambda b: (b, 0, 0)),
                   pl.BlockSpec((1, n_rows, cimg), lambda b: (b, 0, 0))),
        out_shape=(jax.ShapeDtypeStruct((B, n_rows, co), jnp.float32),
                   jax.ShapeDtypeStruct((B, n_rows, cimg), jnp.float32)),
        scratch_shapes=[pltpu.VMEM((lp, ci), jnp.bfloat16)],
        compiler_params=_PARALLEL,
    )(xlin, styles.reshape(B, 1, ci), taps, dcoefs.reshape(B, 1, co),
      noise_wide, bias, wrgb_mod, brgb, res_wide)


# ----------------------------------------------------------------------------
# Plain JAX / numpy glue (layout plumbing, constant operators, parameter prep)
# ----------------------------------------------------------------------------
def _upfirdn1d_matrix(n_in, up, pad0, pad1, taps, gain):
    # 1-D upfirdn linear operator (zero-upsample, pad, correlate with flipped taps).
    t = np.asarray(taps, np.float64)[::-1] * gain
    fw = len(t)
    n_out = n_in * up + pad0 + pad1 - fw + 1
    M = np.zeros((n_out, n_in), np.float64)
    for o in range(n_out):
        for d in range(fw):
            u = o + d - pad0
            if u < 0 or (u % up) != 0:
                continue
            i = u // up
            if 0 <= i < n_in:
                M[o, i] += t[d]
    return jnp.asarray(M, jnp.float32)


def sep_upfirdn2d(x4d, M):
    # Separable 2-D upfirdn: H pass then W pass (same operator both axes, square image).
    B, n, _, C = x4d.shape
    nout = M.shape[0]
    y = rowop(x4d.reshape(B, n, n * C), M)                   # [B, nout, n*C]
    y = y.reshape(B, nout, n, C).transpose(0, 2, 1, 3)       # [B, n, nout, C]
    z = rowop(y.reshape(B, n, nout * C), M)                  # [B, nout, nout*C]
    return z.reshape(B, nout, nout, C).transpose(0, 2, 1, 3)  # [B, nout, nout, C]


def _flatten_padded(xpad4d):
    # [B, Hp, Wp, C] -> [B, Hp*Wp + 2, C]  (+2 rows so the last tap slice stays in bounds)
    B, hp, wp, c = xpad4d.shape
    return jnp.pad(xpad4d.reshape(B, hp * wp, c), ((0, 0), (0, 2), (0, 0)))


def _unwide(o_wide, h, w, wp):
    # [B, h*wp, C] -> [B, h, w, C]  (drop the garbage columns of the wide layout)
    B, _, c = o_wide.shape
    return o_wide.reshape(B, h, wp, c)[:, :, :w, :]


class SimpleSg2GeneratorPallas:
    def __init__(self, key, w_dim, img_resolution, img_channels,
                 channel_base=32768, channel_max=512):
        assert img_resolution >= 4 and (img_resolution & (img_resolution - 1)) == 0
        self.w_dim = w_dim
        self.img_resolution = img_resolution
        self.img_channels = img_channels
        log2 = int(np.log2(img_resolution))
        self.block_resolutions = [2 ** i for i in range(2, log2 + 1)]
        self.channels = {r: min(channel_base // r, channel_max) for r in self.block_resolutions}

        # Per-axis taps of the separable resample filter ([1,3,3,1] normalized); per-axis
        # gain = sqrt(4) = 2 so the product reproduces the 2-D gain of 4.
        f1 = np.array([1.0, 3.0, 3.0, 1.0], np.float64)
        f1 = f1 / f1.sum()
        self.M_conv = {}
        self.M_img = {}
        for r in self.block_resolutions:
            if r > 4:
                hin = r // 2
                self.M_conv[r] = _upfirdn1d_matrix(hin, 2, 3, 2, f1, 2.0)  # [r+2, r//2]
                self.M_img[r] = _upfirdn1d_matrix(hin, 2, 2, 1, f1, 2.0)   # [r,   r//2]

        keys = iter(jax.random.split(key, 256))
        rnd = lambda shape: jax.random.normal(next(keys), shape, dtype=jnp.float32)
        aff_gain = 1.0 / float(np.sqrt(w_dim))

        def prep_synth(cin_l, cout_l, r, up):
            aw = rnd((cin_l, w_dim))
            weight = rnd((cout_l, cin_l, 3, 3))
            noise_const = rnd((r, r))
            noise_strength = jnp.zeros((), jnp.float32)
            bias = jnp.zeros((cout_l,), jnp.float32)
            wp = r + 2
            wconv = weight[:, :, ::-1, ::-1] if up == 2 else weight   # flip_weight=False for up=2
            taps = jnp.transpose(wconv, (2, 3, 1, 0)).reshape(9, cin_l, cout_l).astype(jnp.bfloat16)
            wsq = jnp.transpose(jnp.sum(weight * weight, axis=(2, 3)), (1, 0))  # [Ci, Co]
            noise_wide = jnp.pad(noise_const * noise_strength, ((0, 0), (0, 2))).reshape(r * wp, 1)
            return dict(awT=(aw * aff_gain).T, ab=jnp.ones((1, cin_l), jnp.float32),
                        taps=taps, wsq=wsq, bias=bias.reshape(1, cout_l),
                        noise_wide=noise_wide)

        def prep_torgb(cin_l, cout_l):
            aw = rnd((cin_l, w_dim))
            weight = rnd((cout_l, cin_l, 1, 1))
            bias = jnp.zeros((cout_l,), jnp.float32)
            return dict(awT=(aw * aff_gain).T, ab=jnp.ones((1, cin_l), jnp.float32),
                        wT=jnp.transpose(weight[:, :, 0, 0], (1, 0)),
                        bias=bias.reshape(1, cout_l),
                        wgain=float(1.0 / np.sqrt(cin_l)))

        self.blocks = {}
        self.num_ws = 0
        for r in self.block_resolutions:
            cin_l = self.channels[r // 2] if r > 4 else 0
            cout_l = self.channels[r]
            blk = {}
            if cin_l == 0:
                const = rnd((cout_l, r, r))                                   # CHW parameter
                cpad = jnp.pad(jnp.transpose(const, (1, 2, 0)), ((1, 1), (1, 1), (0, 0)))
                blk['const_lin'] = jnp.pad(cpad.reshape(1, (r + 2) * (r + 2), cout_l),
                                           ((0, 0), (0, 2), (0, 0)))
                num_conv = 1
            else:
                blk['conv0'] = prep_synth(cin_l, cout_l, r, up=2)
                num_conv = 2
            blk['conv1'] = prep_synth(cout_l, cout_l, r, up=1)
            blk['torgb'] = prep_torgb(cout_l, img_channels)
            self.blocks[r] = blk
            self.num_ws += num_conv
            if r == img_resolution:
                self.num_ws += 1

    # ---- forward ------------------------------------------------------------
    def __call__(self, ws):
        ws = ws.astype(jnp.float32)
        B = ws.shape[0]
        sqrt2 = float(np.sqrt(2.0))
        x = None
        img = None           # [B, res, res, img_channels]
        w_idx = 0
        for res in self.block_resolutions:
            blk = self.blocks[res]
            cin = self.channels[res // 2] if res > 4 else 0
            cout = self.channels[res]
            num_conv = 1 if cin == 0 else 2
            cur = ws[:, w_idx:w_idx + num_conv + 1]
            w_idx += num_conv
            wp = res + 2
            n_rows = res * wp
            c1, rg = blk['conv1'], blk['torgb']

            if cin == 0:
                st1, d1, st_r = affine_demod_rgb(cur[:, 0], cur[:, 1],
                                                 c1['awT'], c1['ab'], c1['wsq'],
                                                 rg['awT'], rg['ab'])
                wrgb_mod = (st_r * rg['wgain'])[:, :, None] * rg['wT'][None]   # [B, Co, 3]
                res_wide = jnp.zeros((1, n_rows, self.img_channels), jnp.float32)
                xw, imgw = modconv_rgb(blk['const_lin'], st1, c1['taps'], d1,
                                       c1['noise_wide'], c1['bias'],
                                       wrgb_mod, rg['bias'], res_wide,
                                       h=res, wp=wp, act_gain=sqrt2, shared_x=True)
            else:
                c0 = blk['conv0']
                # conv0: separable upfirdn (up=2, pad (3,2), gain 4) then 3x3 modulated conv
                st0, d0 = affine_demod(cur[:, 0], c0['awT'], c0['ab'], c0['wsq'])
                xpad = sep_upfirdn2d(x, self.M_conv[res])            # [B, res+2, res+2, Ci]
                x0w = modconv(_flatten_padded(xpad), st0, c0['taps'], d0,
                              c0['noise_wide'], c0['bias'],
                              h=res, wp=wp, act_gain=sqrt2)
                x0 = _unwide(x0w, res, res, wp)                      # [B, res, res, Co]
                # conv1 (+ fused ToRGB and skip-image add)
                st1, d1, st_r = affine_demod_rgb(cur[:, 1], cur[:, 2],
                                                 c1['awT'], c1['ab'], c1['wsq'],
                                                 rg['awT'], rg['ab'])
                wrgb_mod = (st_r * rg['wgain'])[:, :, None] * rg['wT'][None]
                xpad1 = jnp.pad(x0, ((0, 0), (1, 1), (1, 1), (0, 0)))
                img_up = sep_upfirdn2d(img, self.M_img[res])         # [B, res, res, 3]
                res_wide = jnp.pad(img_up, ((0, 0), (0, 0), (0, 2), (0, 0))).reshape(
                    B, n_rows, self.img_channels)
                xw, imgw = modconv_rgb(_flatten_padded(xpad1), st1, c1['taps'], d1,
                                       c1['noise_wide'], c1['bias'],
                                       wrgb_mod, rg['bias'], res_wide,
                                       h=res, wp=wp, act_gain=sqrt2)

            x = _unwide(xw, res, res, wp)                            # [B, res, res, Co]
            img = _unwide(imgw, res, res, wp)                        # [B, res, res, 3]

        return jnp.transpose(img, (0, 3, 1, 2))                      # NCHW, float32


# ----------------------------------------------------------------------------
if __name__ == "__main__":
    W_DIM = 32
    IMG_RES = 16
    IMG_CH = 3
    BATCH = 2

    root = jax.random.PRNGKey(0)
    param_key, ws_key = jax.random.split(root)

    gen = SimpleSg2GeneratorPallas(param_key, W_DIM, IMG_RES, IMG_CH,
                                   channel_base=128, channel_max=32)
    # num_ws = 6 for resolutions [4, 8, 16]
    ws = jax.random.normal(ws_key, (BATCH, gen.num_ws, W_DIM), dtype=jnp.float32)

    img = gen(ws)
    img = jax.block_until_ready(img)
    assert img.shape == (BATCH, IMG_CH, IMG_RES, IMG_RES)
    assert img.dtype == jnp.float32
    assert bool(jnp.all(jnp.isfinite(img)))
    # TODO(synk): noise_mode='random' path (torch RNG) not replicated; forward uses
    # noise_mode='const' exactly as SimpleSg2Generator.forward does.
    print("KERNEL_OK")
</pallas_src>

<mosaic_0001>
module attributes {stable_mosaic.version = 11 : i64} {
  func.func @_affine_demod_rgb_kernel(%arg0: memref<2x32xf32, #tpu.memory_space<vmem>>, %arg1: memref<2x32xf32, #tpu.memory_space<vmem>>, %arg2: memref<32x32xf32, #tpu.memory_space<vmem>>, %arg3: memref<1x32xf32, #tpu.memory_space<vmem>>, %arg4: memref<32x32xf32, #tpu.memory_space<vmem>>, %arg5: memref<32x32xf32, #tpu.memory_space<vmem>>, %arg6: memref<1x32xf32, #tpu.memory_space<vmem>>, %arg7: memref<2x32xf32, #tpu.memory_space<vmem>>, %arg8: memref<2x32xf32, #tpu.memory_space<vmem>>, %arg9: memref<2x32xf32, #tpu.memory_space<vmem>>) attributes {dimension_semantics = [], scalar_prefetch = 0 : i64, scratch_operands = 0 : i64, tpu.core_type = #tpu.core_type<tc>} {
    %c0 = arith.constant 0 : index
    %c0_0 = arith.constant 0 : index
    %0 = vector.load %arg0[%c0, %c0_0] : memref<2x32xf32, #tpu.memory_space<vmem>>, vector<2x32xf32>
    %c0_1 = arith.constant 0 : index
    %c0_2 = arith.constant 0 : index
    %1 = vector.load %arg2[%c0_1, %c0_2] : memref<32x32xf32, #tpu.memory_space<vmem>>, vector<32x32xf32>
    %cst = arith.constant dense<0.000000e+00> : vector<2x32xf32>
    %2 = tpu.matmul %0, %1, %cst {dimension_numbers = #tpu.dot_dimension_numbers<[1], [0], [0], [1], [0, 0, 1, 1], [], []>} : vector<2x32xf32>, vector<32x32xf32>, vector<2x32xf32> -> vector<2x32xf32>
    %c0_3 = arith.constant 0 : index
    %c0_4 = arith.constant 0 : index
    %3 = vector.load %arg3[%c0_3, %c0_4] : memref<1x32xf32, #tpu.memory_space<vmem>>, vector<1x32xf32>
    %4 = vector.broadcast %3 : vector<1x32xf32> to vector<2x32xf32>
    %5 = arith.addf %2, %4 : vector<2x32xf32>
    %c0_5 = arith.constant 0 : index
    %c0_6 = arith.constant 0 : index
    %6 = vector.load %arg7[%c0_5, %c0_6] : memref<2x32xf32, #tpu.memory_space<vmem>>, vector<2x32xf32>
    tpu.vector_store %arg7[%c0_5, %c0_6], %5 {strides = array<i32>} : memref<2x32xf32, #tpu.memory_space<vmem>>, vector<2x32xf32>,
    %7 = arith.mulf %5, %5 : vector<2x32xf32>
    %c0_7 = arith.constant 0 : index
    %c0_8 = arith.constant 0 : index
    %8 = vector.load %arg4[%c0_7, %c0_8] : memref<32x32xf32, #tpu.memory_space<vmem>>, vector<32x32xf32>
    %cst_9 = arith.constant dense<0.000000e+00> : vector<2x32xf32>
    %9 = tpu.matmul %7, %8, %cst_9 {dimension_numbers = #tpu.dot_dimension_numbers<[1], [0], [0], [1], [0, 0, 1, 1], [], []>} : vector<2x32xf32>, vector<32x32xf32>, vector<2x32xf32> -> vector<2x32xf32>
    %cst_10 = arith.constant 9.99999993E-9 : f32
    %10 = vector.broadcast %cst_10 : f32 to vector<2x32xf32>
    %11 = arith.addf %9, %10 : vector<2x32xf32>
    %12 = math.rsqrt %11 : vector<2x32xf32>
    %c0_11 = arith.constant 0 : index
    %c0_12 = arith.constant 0 : index
    %13 = vector.load %arg8[%c0_11, %c0_12] : memref<2x32xf32, #tpu.memory_space<vmem>>, vector<2x32xf32>
    tpu.vector_store %arg8[%c0_11, %c0_12], %12 {strides = array<i32>} : memref<2x32xf32, #tpu.memory_space<vmem>>, vector<2x32xf32>,
    %c0_13 = arith.constant 0 : index
    %c0_14 = arith.constant 0 : index
    %14 = vector.load %arg1[%c0_13, %c0_14] : memref<2x32xf32, #tpu.memory_space<vmem>>, vector<2x32xf32>
    %c0_15 = arith.constant 0 : index
    %c0_16 = arith.constant 0 : index
    %15 = vector.load %arg5[%c0_15, %c0_16] : memref<32x32xf32, #tpu.memory_space<vmem>>, vector<32x32xf32>
    %cst_17 = arith.constant dense<0.000000e+00> : vector<2x32xf32>
    %16 = tpu.matmul %14, %15, %cst_17 {dimension_numbers = #tpu.dot_dimension_numbers<[1], [0], [0], [1], [0, 0, 1, 1], [], []>} : vector<2x32xf32>, vector<32x32xf32>, vector<2x32xf32> -> vector<2x32xf32>
    %c0_18 = arith.constant 0 : index
    %c0_19 = arith.constant 0 : index
    %17 = vector.load %arg6[%c0_18, %c0_19] : memref<1x32xf32, #tpu.memory_space<vmem>>, vector<1x32xf32>
    %18 = vector.broadcast %17 : vector<1x32xf32> to vector<2x32xf32>
    %19 = arith.addf %16, %18 : vector<2x32xf32>
    %c0_20 = arith.constant 0 : index
    %c0_21 = arith.constant 0 : index
    %20 = vector.load %arg9[%c0_20, %c0_21] : memref<2x32xf32, #tpu.memory_space<vmem>>, vector<2x32xf32>
    tpu.vector_store %arg9[%c0_20, %c0_21], %19 {strides = array<i32>} : memref<2x32xf32, #tpu.memory_space<vmem>>, vector<2x32xf32>,
    return
  }
}

</mosaic_0001>

<bundles_post_ra>
// kernel: tpu_custom_call.1
= control target key start
LH: loop header
LB: loop body
LE: loop exit
PB: predicated region body
PF: predicated region fallthrough
CT: control target
= control target key end

     0   :  { %15 = vsyncpa [#allocation3], 0  ;;  %s577_s0 = inlined_call_operand.hbm [shape: f32[2,32], index: 0, kind: input, shape index: {}]   ;;  %s578_s1 = inlined_call_operand.hbm [shape: f32[2,32], index: 1, kind: input, shape index: {}]   ;;  %s579_s2 = inlined_call_operand.hbm [shape: f32[32,32], index: 2, kind: input, shape index: {}]   ;;  %s580_s3 = inlined_call_operand.vmem [shape: f32[1,32], index: 3, kind: input, shape index: {}]   ;;  %s581_s4 = inlined_call_operand.hbm [shape: f32[32,32], index: 4, kind: input, shape index: {}]   ;;  %s582_s5 = inlined_call_operand.hbm [shape: f32[32,32], index: 5, kind: input, shape index: {}]   ;;  %s583_s6 = inlined_call_operand.vmem [shape: f32[1,32], index: 6, kind: input, shape index: {}]   ;;  %s584_s7 = inlined_call_operand.hbm [shape: f32[2,32], index: 7, kind: output, shape index: {0}]   ;;  %s585_s8 = inlined_call_operand.hbm [shape: f32[2,32], index: 8, kind: output, shape index: {1}]   ;;  %s586_s9 = inlined_call_operand.hbm [shape: f32[2,32], index: 9, kind: output, shape index: {2}]  }
   0x1   :  { %16 = vsyncpa [#allocation6], 0 }
   0x2   :  { %17 = vsyncpa [#allocation9], 0 }
   0x3   :  { %18 = vsyncpa [#allocation4], 0  ;;  %s36_s11 = sshll.u32 %s578_s1, 4  ;;  %s37_s11 = int_to_ptr.hbm [resolvable:$true] %s36_s11 }
   0x4   :  { %19 = vsyncpa [#allocation13], 0  ;;  %s481_s12 = smov [#allocation5]   ;;  %s61_s16 = sshll.u32 %s581_s4, 4  ;;  %s62_s16 = int_to_ptr.hbm [resolvable:$true] %s61_s16 }
   0x5   :  { %s38_s13 = sshll.u32 %s481_s12, 4  ;;  %s482_s17 = smov [#allocation8]   ;;  %s39_s13 = int_to_ptr.vmem [resolvable:$true] %s38_s13 }
   0x6   :  { %41 = dma.hbm_to_vmem [thread:$0]  %s37_s11, 32, %s39_s13, [#allocation6]  }
   0x7   :  { %s63_s18 = sshll.u32 %s482_s17, 4  ;;  %s25_s21 = sshll.u32 %s577_s0, 4  ;;  %s64_s18 = int_to_ptr.vmem [resolvable:$true] %s63_s18  ;;  %s26_s21 = int_to_ptr.hbm [resolvable:$true] %s25_s21 }
   0x8   :  { %s483_s1 = smov 128   ;;  %s484_s22 = smov 8  }
   0x9   :  { %69 = dma.hbm_to_vmem [thread:$0]  %s62_s16, 512, %s64_s18, [#allocation9], %s483_s1, %s483_s1, %s484_s22  }
   0xa   :  { %s46_s25 = sshll.u32 %s579_s2, 4  ;;  %s485_s26 = smov [#allocation2]   ;;  %s47_s25 = int_to_ptr.hbm [resolvable:$true] %s46_s25 }
   0xb   :  { %s27_s27 = sshll.u32 %s485_s26, 4  ;;  %s486_s4 = smov [#allocation7]   ;;  %s28_s27 = int_to_ptr.vmem [resolvable:$true] %s27_s27 }
   0xc   :  { %30 = dma.hbm_to_vmem [thread:$0]  %s26_s21, 32, %s28_s27, [#allocation3]  }
   0xd   :  { %s48_s28 = sshll.u32 %s486_s4, 4  ;;  %s74_s0 = sshll.u32 %s582_s5, 4  ;;  %s49_s28 = int_to_ptr.vmem [resolvable:$true] %s48_s28  ;;  %s75_s0 = int_to_ptr.hbm [resolvable:$true] %s74_s0 }
   0xe   :  { %54 = dma.hbm_to_vmem [thread:$0]  %s47_s25, 512, %s49_s28, [#allocation6], %s483_s1, %s483_s1, %s484_s22  }
   0xf   :  { %s487_s10 = smov [#allocation10]  }
  0x10   :  { %s76_s11 = sshll.u32 %s487_s10, 4  ;;  %s77_s11 = int_to_ptr.vmem [resolvable:$true] %s76_s11 }
  0x11   :  { %82 = dma.hbm_to_vmem [thread:$0]  %s75_s0, 512, %s77_s11, [#allocation9], %s483_s1, %s483_s1, %s484_s22  }
  0x12   :  { %471 = dma.done.wait [#allocation3], 32  }
  0x13   :  { %472 = vsyncadd [#allocation3], 4294967264 }
  0x14   :  { %473 = dma.done.wait [#allocation6], 544  }
  0x15   :  { %474 = vsyncadd [#allocation6], 4294966752 }
  0x16   :  { %475 = dma.done.wait [#allocation9], 1024  }
  0x17   :  { %476 = vsyncadd [#allocation9], 4294966272  ;;  %v109_v0 = vld [vmem:[#allocation7 + $0x18] sm:$0xff]  ;;  %v108_v1 = vld [vmem:[#allocation7 + $0x10] sm:$0xff]  ;;  %vm114_vm0 = vcmask 261120   ;;  %vm138_vm1 = vcmask 254976  }
  0x18   :  { %130 = vmatpush.msra.mxu0 %v109_v0  ;;  %v144_v2 = vld [vmem:[#allocation8 + $0x18] sm:$0xff]  ;;  %v107_v3 = vld [vmem:[#allocation7 + $0x8] sm:$0xff]  ;;  %v106_v4 = vld [vmem:[#allocation7] sm:$0xff]  ;;  %s219_s14 = sshll.u32 %s584_s7, 4  ;;  %s488_s15 = smov [#allocation11]   ;;  %s220_s14 = int_to_ptr.hbm [resolvable:$true] %s219_s14 }
  0x19   :  { %160 = vmatpush.msra.mxu1 %v144_v2  ;;  %v105_v5 = vld [vmem:[#allocation2] sm:$0x3]  ;;  %v143_v6 = vld [vmem:[#allocation8 + $0x10] sm:$0xff]  ;;  %v142_v7 = vld [vmem:[#allocation8 + $0x8] sm:$0xff]  ;;  %s217_s16 = sshll.u32 %s488_s15, 4  ;;  %s230_s21 = sshll.u32 %s585_s8, 4  ;;  %s218_s16 = int_to_ptr.vmem [resolvable:$true] %s217_s16  ;;  %s231_s21 = int_to_ptr.hbm [resolvable:$true] %s230_s21 }
  0x1a   :  { %131 = vmatpush.msra.mxu0 %v108_v1  ;;  %v141_v8 = vld [vmem:[#allocation8] sm:$0xff]  ;;  %v183_v9 = vld [vmem:[#allocation10 + $0x18] sm:$0xff]  ;;  %v182_v10 = vld [vmem:[#allocation10 + $0x10] sm:$0xff]  ;;  %s241_s24 = sshll.u32 %s586_s9, 4  ;;  %s242_s24 = int_to_ptr.hbm [resolvable:$true] %s241_s24 }
  0x1b   :  { %161 = vmatpush.msra.mxu1 %v143_v6  ;;  %203 = vmatpush.msra.mxu2 %v183_v9  ;;  %v181_v11 = vld [vmem:[#allocation10 + $0x8] sm:$0xff]  ;;  %v180_v12 = vld [vmem:[#allocation10] sm:$0xff]  ;;  %v179_v13 = vld [vmem:[#allocation5] sm:$0x3] }
  0x1c   :  { %132 = vmatpush.msra.mxu0 %v107_v3  ;;  %v275_v14 = vld [vmem:[%s580_s3] ss:$0 sm:$0xff]  ;;  %s489_s3 = smov [#allocation12]  }
  0x1d   :  { %162 = vmatpush.msra.mxu1 %v142_v7  ;;  %204 = vmatpush.msra.mxu2 %v182_v10  ;;  %v276_v18 = vld [vmem:[%s583_s6] ss:$0 sm:$0xff]  ;;  %s228_s7 = sshll.u32 %s489_s3, 4  ;;  %s490_s6 = smov [#allocation14]   ;;  %s229_s7 = int_to_ptr.vmem [resolvable:$true] %s228_s7 }
  0x1e   :  { %133 = vmatpush.msra.mxu0 %v106_v4  ;;  %s239_s1 = sshll.u32 %s490_s6, 4  ;;  %s240_s1 = int_to_ptr.vmem [resolvable:$true] %s239_s1 }
  0x1f   :  { %262 = vmatmul.msk.f32.vlgmr.msra.gmra.mxu0 %vm114_vm0, %v105_v5  ;;  %163 = vmatpush.msra.mxu1 %v141_v8 }
  0x20   :  { %205 = vmatpush.msra.mxu2 %v181_v11 }
  0x22   :  { %206 = vmatpush.msra.mxu2 %v180_v12 }
  0x23   :  { %264 = vmatmul.msk.f32.vlgmr.msra.gmra.mxu2 %vm114_vm0, %v179_v13 }
  0x9c   :  { %v135_v15 = vpop.f32.mrf.mxu0 }
  0x9d   :  { %v136_v16 = vadd.f32 %v275_v14, %v135_v15 }
  0x9f   :  { %v140_v17 = vmul.f32 %v136_v16, %v136_v16  ;;  %139 = vst.msk [vmem:[#allocation11] sm:$0x3] %vm138_vm1, %v136_v16 }
  0xa0   :  { %222 = dma.vmem_to_hbm [thread:$0]  %s218_s16, 32, %s220_s14, [#allocation4]  }
  0xa1   :  { %263 = vmatmul.msk.f32.vlgmr.msra.gmra.mxu1 %vm114_vm0, %v140_v17 }
  0xa6   :  { %v208_v19 = vpop.f32.mrf.mxu2 }
  0xa7   :  { %v209_v20 = vadd.f32 %v276_v18, %v208_v19 }
  0xa9   :  { %211 = vst.msk [vmem:[#allocation14] sm:$0x3] %vm138_vm1, %v209_v20 }
 0x11e   :  { %v165_v21 = vpop.f32.mrf.mxu1 }
 0x11f   :  { %v166_v22 = vadd.f32 1e-08, %v165_v21 }
 0x121   :  { %277 = vrsqrt.f32 %v166_v22  ;;  %vm174_vm3 = vweird.f32 %v166_v22 }
 0x127   :  { %v278_v23 = vpop.eup %277 }
 0x128   :  { %v169_v24 = vmul.f32 %v278_v23, %v166_v22  ;;  %vm175_vm2 = vweird.f32 %v278_v23 }
 0x129   :  { %vm176_vm4 = vmor %vm174_vm3, %vm175_vm2 }
 0x12a   :  { %v170_v25 = vmul.f32 %v278_v23, %v169_v24 }
 0x12c   :  { %v171_v26 = vmul.f32 0.5, %v170_v25 }
 0x12e   :  { %v172_v27 = vsub.f32 1.5, %v171_v26 }
 0x130   :  { %v173_v28 = vmul.f32 %v278_v23, %v172_v27 }
 0x132   :  { %v177_v29 = vsel %vm176_vm4, %v278_v23, %v173_v28 }
 0x133   :  { %178 = vst.msk [vmem:[#allocation12] sm:$0x3] %vm138_vm1, %v177_v29 }
 0x134   :  { %233 = dma.vmem_to_hbm [thread:$0]  %s229_s7, 32, %s231_s21, [#allocation13]  }
 0x135   :  { %244 = dma.vmem_to_hbm [thread:$0]  %s240_s1, 32, %s242_s24, [#allocation13]  }
 0x136   :  { %477 = dma.done.wait [#allocation4], 32  }
 0x137   :  { %478 = vsyncadd [#allocation4], 4294967264 }
 0x138   :  { %479 = dma.done.wait [#allocation13], 64  }
 0x139   :  { %480 = vsyncadd [#allocation13], 4294967232 }
 0x13a   :  { %257 = vsyncpa [#allocation3], 1 }
 0x13b   :  { %258 = vsyncpa [#allocation6], 1 }
 0x13c   :  { %259 = vsyncpa [#allocation9], 1 }
 0x13d   :  { %260 = vsyncpa [#allocation4], 1 }
 0x13e   :  { %261 = vsyncpa [#allocation13], 1 }

</bundles_post_ra>
